<compile_context>
chip_gen: v5e
topology: v5e:2x2
jax: 0.10.0
libtpu: 0.0.40
codegen_flags: <defaults>
</compile_context>

<pallas_src>
import jax
import jax.numpy as jnp
from jax.experimental import pallas as pl
from jax.experimental.pallas import tpu as pltpu

_SUBLANE = 8                      # f32 sublane count (second-to-last vreg dim)
_VMEM_CAP = 48 * 1024 * 1024      # keep within v7x's 64 MiB physical VMEM per TC


def _round_up(n, m):
    return ((n + m - 1) // m) * m


def _one_layer_kernel(x_ref, w1_ref, b1_ref, w2_ref, b2_ref, o_ref):
    # Fused: x @ W1 + b1 -> sigmoid -> @ W2 + b2 -> sigmoid. All intermediates in VMEM.
    x = x_ref[...]                                                 # (TB, num_inputs)
    h = jnp.dot(x, w1_ref[...], preferred_element_type=jnp.float32)
    h = jax.nn.sigmoid(h + b1_ref[...])                            # (TB, num_hidden)
    y = jnp.dot(h, w2_ref[...], preferred_element_type=jnp.float32)
    y = jax.nn.sigmoid(y + b2_ref[...])                            # (TB, num_out)
    o_ref[...] = y.astype(o_ref.dtype)


def one_layer_forward(x, w1, b1, w2, b2, *, tile_b=4096):
    """Pallas implementation of OneLayer.forward.

    x:  (B, num_inputs)
    w1: (num_inputs, num_hidden)   b1: (1, num_hidden)
    w2: (num_hidden, num_out)      b2: (1, num_out)
    returns (B, num_out) = sigmoid(sigmoid(x@w1+b1)@w2+b2), computed in float32.
    """
    B, num_inputs = x.shape
    num_hidden = w1.shape[1]
    num_out = w2.shape[1]

    # ---- Batch-tile selection -----------------------------------------------------
    # Per-row VMEM footprint: double-buffered x tile + double-buffered out tile + h.
    weight_bytes = 4 * (w1.size + b1.size + w2.size + b2.size)
    per_row_bytes = 4 * (2 * num_inputs + 2 * num_out + num_hidden)
    avail = max(per_row_bytes, _VMEM_CAP // 2 - weight_bytes)     # 2x compiler headroom
    max_tile_b = max(_SUBLANE, (avail // per_row_bytes) // _SUBLANE * _SUBLANE)

    tile_b = max(_SUBLANE, _round_up(min(tile_b, max_tile_b), _SUBLANE))
    if B >= 2 * _SUBLANE:
        # Force >= 2 grid tiles so the "parallel" batch axis can be split across
        # v7x's 2 TensorCores (harmless elsewhere).
        tile_b = min(tile_b, max(_SUBLANE, _round_up(pl.cdiv(B, 2), _SUBLANE)))
    num_tiles = pl.cdiv(B, tile_b)

    # ---- Scheduling hints -----------------------------------------------------------
    flops = 2 * B * (num_inputs * num_hidden + num_hidden * num_out)
    transcendentals = B * (num_hidden + num_out)
    bytes_accessed = 4 * (x.size + w1.size + b1.size + w2.size + b2.size + B * num_out)
    cost = pl.CostEstimate(flops=flops,
                           transcendentals=transcendentals,
                           bytes_accessed=bytes_accessed)

    requirement = weight_bytes + tile_b * per_row_bytes
    vmem_budget = int(min(_VMEM_CAP, max(4 * 1024 * 1024, 2 * requirement)))

    out_shape = jax.ShapeDtypeStruct((B, num_out), x.dtype)

    if num_tiles == 1:
        # Tiny batch: whole-array VMEM blocks, no grid-loop scaffolding.
        return pl.pallas_call(
            _one_layer_kernel,
            out_shape=out_shape,
            in_specs=[pl.BlockSpec(memory_space=pltpu.MemorySpace.VMEM)] * 5,
            out_specs=pl.BlockSpec(memory_space=pltpu.MemorySpace.VMEM),
            compiler_params=pltpu.CompilerParams(vmem_limit_bytes=vmem_budget),
            cost_estimate=cost,
        )(x, w1, b1, w2, b2)

    # Batch-tiled parallel grid: x/out tiles stream (narrow, unpadded last dims equal
    # the full array dims so the (8,128) rule is satisfied); weights stay resident.
    # Non-divisible B is handled by Pallas partial-block masking on the last tile.
    return pl.pallas_call(
        _one_layer_kernel,
        out_shape=out_shape,
        grid=(num_tiles,),
        in_specs=[
            pl.BlockSpec((tile_b, num_inputs), lambda i: (i, 0)),
            pl.BlockSpec((num_inputs, num_hidden), lambda i: (0, 0)),
            pl.BlockSpec((1, num_hidden), lambda i: (0, 0)),
            pl.BlockSpec((num_hidden, num_out), lambda i: (0, 0)),
            pl.BlockSpec((1, num_out), lambda i: (0, 0)),
        ],
        out_specs=pl.BlockSpec((tile_b, num_out), lambda i: (i, 0)),
        compiler_params=pltpu.CompilerParams(
            dimension_semantics=("parallel",),
            vmem_limit_bytes=vmem_budget,
        ),
        cost_estimate=cost,
    )(x, w1, b1, w2, b2)


def reference_forward(x, w1, b1, w2, b2):
    h = jax.nn.sigmoid(x @ w1 + b1)
    return jax.nn.sigmoid(h @ w2 + b2)


if __name__ == "__main__":
    # Module hyperparameters (OneLayer(num_inputs, num_hidden, num_out)).
    batch, num_inputs, num_hidden, num_out = 8, 16, 32, 8

    key = jax.random.PRNGKey(0)
    kx, kw1, kb1, kw2, kb2 = jax.random.split(key, 5)

    x = jax.random.normal(kx, (batch, num_inputs), dtype=jnp.float32)

    # Deterministic init mimicking nn.Linear's uniform(-1/sqrt(fan_in), 1/sqrt(fan_in)).
    bound1 = 1.0 / jnp.sqrt(jnp.float32(num_inputs))
    w1 = jax.random.uniform(kw1, (num_inputs, num_hidden), jnp.float32, -bound1, bound1)
    b1 = jax.random.uniform(kb1, (1, num_hidden), jnp.float32, -bound1, bound1)

    bound2 = 1.0 / jnp.sqrt(jnp.float32(num_hidden))
    w2 = jax.random.uniform(kw2, (num_hidden, num_out), jnp.float32, -bound2, bound2)
    b2 = jax.random.uniform(kb2, (1, num_out), jnp.float32, -bound2, bound2)

    # 1) Tiny batch -> gridless whole-array path.
    y = one_layer_forward(x, w1, b1, w2, b2)
    jax.block_until_ready(y)
    y_ref = reference_forward(x, w1, b1, w2, b2)
    assert y.shape == (batch, num_out)
    assert jnp.allclose(y, y_ref, atol=1e-5, rtol=1e-5), "mismatch vs reference (gridless)"

    # 2) Larger batch with a small explicit tile -> batch-tiled parallel grid (4 tiles).
    batch2 = 32
    x2 = jax.random.normal(jax.random.PRNGKey(1), (batch2, num_inputs), dtype=jnp.float32)
    y2 = one_layer_forward(x2, w1, b1, w2, b2, tile_b=8)
    jax.block_until_ready(y2)
    y2_ref = reference_forward(x2, w1, b1, w2, b2)
    assert y2.shape == (batch2, num_out)
    assert jnp.allclose(y2, y2_ref, atol=1e-5, rtol=1e-5), "mismatch vs reference (tiled)"

    # 3) Batch not divisible by the tile -> exercises Pallas partial-block masking.
    batch3 = 37
    x3 = jax.random.normal(jax.random.PRNGKey(2), (batch3, num_inputs), dtype=jnp.float32)
    y3 = one_layer_forward(x3, w1, b1, w2, b2)
    jax.block_until_ready(y3)
    y3_ref = reference_forward(x3, w1, b1, w2, b2)
    assert y3.shape == (batch3, num_out)
    assert jnp.allclose(y3, y3_ref, atol=1e-5, rtol=1e-5), "mismatch vs reference (ragged)"

    print("KERNEL_OK")
</pallas_src>

<mosaic_0001>
module attributes {stable_mosaic.version = 11 : i64} {
  func.func @_one_layer_kernel(%arg0: memref<8x16xf32, #tpu.memory_space<vmem>>, %arg1: memref<16x32xf32, #tpu.memory_space<vmem>>, %arg2: memref<1x32xf32, #tpu.memory_space<vmem>>, %arg3: memref<32x8xf32, #tpu.memory_space<vmem>>, %arg4: memref<1x8xf32, #tpu.memory_space<vmem>>, %arg5: memref<8x8xf32, #tpu.memory_space<vmem>>) attributes {dimension_semantics = [], scalar_prefetch = 0 : i64, scratch_operands = 0 : i64, tpu.core_type = #tpu.core_type<tc>} {
    %c0 = arith.constant 0 : index
    %c0_0 = arith.constant 0 : index
    %0 = vector.load %arg0[%c0, %c0_0] : memref<8x16xf32, #tpu.memory_space<vmem>>, vector<8x16xf32>
    %c0_1 = arith.constant 0 : index
    %c0_2 = arith.constant 0 : index
    %1 = vector.load %arg1[%c0_1, %c0_2] : memref<16x32xf32, #tpu.memory_space<vmem>>, vector<16x32xf32>
    %cst = arith.constant dense<0.000000e+00> : vector<8x32xf32>
    %2 = tpu.matmul %0, %1, %cst {dimension_numbers = #tpu.dot_dimension_numbers<[1], [0], [0], [1], [0, 0, 1, 1], [], []>} : vector<8x16xf32>, vector<16x32xf32>, vector<8x32xf32> -> vector<8x32xf32>
    %c0_3 = arith.constant 0 : index
    %c0_4 = arith.constant 0 : index
    %3 = vector.load %arg2[%c0_3, %c0_4] : memref<1x32xf32, #tpu.memory_space<vmem>>, vector<1x32xf32>
    %4 = vector.broadcast %3 : vector<1x32xf32> to vector<8x32xf32>
    %5 = arith.addf %2, %4 : vector<8x32xf32>
    %6 = arith.negf %5 : vector<8x32xf32>
    %7 = math.exp %6 : vector<8x32xf32>
    %cst_5 = arith.constant 1.000000e+00 : f32
    %8 = vector.broadcast %cst_5 : f32 to vector<8x32xf32>
    %9 = arith.addf %8, %7 : vector<8x32xf32>
    %10 = arith.divf %8, %9 : vector<8x32xf32>
    %c0_6 = arith.constant 0 : index
    %c0_7 = arith.constant 0 : index
    %11 = vector.load %arg3[%c0_6, %c0_7] : memref<32x8xf32, #tpu.memory_space<vmem>>, vector<32x8xf32>
    %cst_8 = arith.constant dense<0.000000e+00> : vector<8x8xf32>
    %12 = tpu.matmul %10, %11, %cst_8 {dimension_numbers = #tpu.dot_dimension_numbers<[1], [0], [0], [1], [0, 0, 1, 1], [], []>} : vector<8x32xf32>, vector<32x8xf32>, vector<8x8xf32> -> vector<8x8xf32>
    %c0_9 = arith.constant 0 : index
    %c0_10 = arith.constant 0 : index
    %13 = vector.load %arg4[%c0_9, %c0_10] : memref<1x8xf32, #tpu.memory_space<vmem>>, vector<1x8xf32>
    %14 = vector.broadcast %13 : vector<1x8xf32> to vector<8x8xf32>
    %15 = arith.addf %12, %14 : vector<8x8xf32>
    %16 = arith.negf %15 : vector<8x8xf32>
    %17 = math.exp %16 : vector<8x8xf32>
    %cst_11 = arith.constant 1.000000e+00 : f32
    %18 = vector.broadcast %cst_11 : f32 to vector<8x8xf32>
    %19 = arith.addf %18, %17 : vector<8x8xf32>
    %20 = arith.divf %18, %19 : vector<8x8xf32>
    %c0_12 = arith.constant 0 : index
    %c0_13 = arith.constant 0 : index
    %21 = vector.load %arg5[%c0_12, %c0_13] : memref<8x8xf32, #tpu.memory_space<vmem>>, vector<8x8xf32>
    tpu.vector_store %arg5[%c0_12, %c0_13], %20 {strides = array<i32>} : memref<8x8xf32, #tpu.memory_space<vmem>>, vector<8x8xf32>,
    return
  }
}

</mosaic_0001>

<bundles_post_ra>
// kernel: tpu_custom_call.1
= control target key start
LH: loop header
LB: loop body
LE: loop exit
PB: predicated region body
PF: predicated region fallthrough
CT: control target
= control target key end

     0   :  { %vm28_vm0 = vcmask 130048   ;;  %s242_s0 = inlined_call_operand.vmem [shape: f32[8,16], index: 0, kind: input, shape index: {}]   ;;  %s243_s1 = inlined_call_operand.vmem [shape: f32[16,32], index: 1, kind: input, shape index: {}]   ;;  %s244_s2 = inlined_call_operand.vmem [shape: f32[1,32], index: 2, kind: input, shape index: {}]   ;;  %s245_s3 = inlined_call_operand.vmem [shape: f32[32,8], index: 3, kind: input, shape index: {}]   ;;  %s246_s4 = inlined_call_operand.vmem [shape: f32[1,8], index: 4, kind: input, shape index: {}]   ;;  %s247_s5 = inlined_call_operand.hbm [shape: f32[8,8], index: 5, kind: output, shape index: {}]  }
   0x1   :  { %v23_v0 = vld [vmem:[%s243_s1 + $0x8] sm:$0xff]  ;;  %v22_v1 = vld [vmem:[%s243_s1] sm:$0xff] }
   0x2   :  { %46 = vmatpush.msra.mxu0 %v23_v0  ;;  %v21_v2 = vld [vmem:[%s242_s0] sm:$0xff] }
   0x3   :  { %10 = vsyncpa [#allocation3], 0  ;;  %v74_v3 = vld [vmem:[%s245_s3 + $0x18] sm:$0xff]  ;;  %v73_v4 = vld [vmem:[%s245_s3 + $0x10] sm:$0xff]  ;;  %vm79_vm4 = vcmask 261120   ;;  %s181_s7 = smov [#allocation2]  }
   0x4   :  { %47 = vmatpush.msra.mxu0 %v22_v1  ;;  %95 = vmatpush.msra.mxu1 %v74_v3  ;;  %v72_v5 = vld [vmem:[%s245_s3 + $0x8] sm:$0xff]  ;;  %v71_v6 = vld [vmem:[%s245_s3] sm:$0xff]  ;;  %s129_s8 = sshll.u32 %s181_s7, 4  ;;  %vm122_vm9 = vcmask 64512   ;;  %s130_s8 = int_to_ptr.vmem [resolvable:$true] %s129_s8 }
   0x5   :  { %140 = vmatmul.msk.f32.vlgmr.msra.gmra.mxu0 %vm28_vm0, %v21_v2  ;;  %v145_v7 = vld [vmem:[%s244_s2] ss:$0 sm:$0xff] }
   0x6   :  { %96 = vmatpush.msra.mxu1 %v73_v4  ;;  %v146_v23 = vld [vmem:[%s246_s4] ss:$0 sm:$0xff]  ;;  %s131_s4 = sshll.u32 %s247_s5, 4  ;;  %s132_s4 = int_to_ptr.hbm [resolvable:$true] %s131_s4 }
   0x8   :  { %97 = vmatpush.msra.mxu1 %v72_v5 }
   0xa   :  { %98 = vmatpush.msra.mxu1 %v71_v6 }
  0x82   :  { %v49_v8 = vpop.f32.mrf.mxu0 }
  0x83   :  { %v50_v9 = vadd.f32 %v145_v7, %v49_v8 }
  0x85   :  { %v141_v10 = vmul.f32 -1.442695, %v50_v9 }
  0x87   :  { %147 = vpow2.f32 %v141_v10 }
  0x8d   :  { %v148_v11 = vpop.eup %147 }
  0x8e   :  { %v55_v12 = vadd.f32 1.0, %v148_v11 }
  0x90   :  { %149 = vrcp.f32 %v55_v12  ;;  %v67_v16 = vand.u32 2147483648, %v55_v12  ;;  %v65_v18 = vand.u32 2147483647, %v55_v12  ;;  %vm61_vm2 = vweird.f32 %v55_v12 }
  0x92   :  { %v68_v20 = vor.u32 1.1754944e-38, %v67_v16  ;;  %vm66_vm5 = vcmp.eq.f32.partialorder %v65_v18, 8.507059e+37 }
  0x96   :  { %v150_v13 = vpop.eup %149 }
  0x97   :  { %v57_v14 = vmul.f32 %v150_v13, %v55_v12  ;;  %vm62_vm1 = vweird.f32 %v150_v13 }
  0x98   :  { %vm63_vm3 = vmor %vm61_vm2, %vm62_vm1 }
  0x99   :  { %v58_v15 = vsub.f32 1.0, %v57_v14 }
  0x9b   :  { %v59_v17 = vmul.f32 %v150_v13, %v58_v15 }
  0x9d   :  { %v60_v19 = vadd.f32 %v150_v13, %v59_v17 }
  0x9f   :  { %v64_v21 = vsel %vm63_vm3, %v150_v13, %v60_v19 }
  0xa0   :  { %v69_v22 = vsel %vm66_vm5, %v68_v20, %v64_v21 }
  0xa1   :  { %142 = vmatmul.msk.f32.vlgmr.msra.gmra.mxu1 %vm79_vm4, %v69_v22 }
 0x11e   :  { %v100_v24 = vpop.f32.mrf.mxu1 }
 0x11f   :  { %v101_v25 = vadd.f32 %v146_v23, %v100_v24 }
 0x121   :  { %v143_v26 = vmul.f32 -1.442695, %v101_v25 }
 0x123   :  { %151 = vpow2.f32 %v143_v26 }
 0x129   :  { %v152_v27 = vpop.eup %151 }
 0x12a   :  { %v106_v28 = vadd.f32 1.0, %v152_v27 }
 0x12c   :  { %153 = vrcp.f32 %v106_v28  ;;  %v118_v32 = vand.u32 2147483648, %v106_v28  ;;  %v116_v34 = vand.u32 2147483647, %v106_v28  ;;  %vm112_vm7 = vweird.f32 %v106_v28 }
 0x12e   :  { %v119_v36 = vor.u32 1.1754944e-38, %v118_v32  ;;  %vm117_vm10 = vcmp.eq.f32.partialorder %v116_v34, 8.507059e+37 }
 0x132   :  { %v154_v29 = vpop.eup %153 }
 0x133   :  { %v108_v30 = vmul.f32 %v154_v29, %v106_v28  ;;  %vm113_vm6 = vweird.f32 %v154_v29 }
 0x134   :  { %vm114_vm8 = vmor %vm112_vm7, %vm113_vm6 }
 0x135   :  { %v109_v31 = vsub.f32 1.0, %v108_v30 }
 0x137   :  { %v110_v33 = vmul.f32 %v154_v29, %v109_v31 }
 0x139   :  { %v111_v35 = vadd.f32 %v154_v29, %v110_v33 }
 0x13b   :  { %v115_v37 = vsel %vm114_vm8, %v154_v29, %v111_v35 }
 0x13c   :  { %v120_v38 = vsel %vm117_vm10, %v119_v36, %v115_v37 }
 0x13d   :  { %123 = vst.msk [vmem:[#allocation2] sm:$0xff] %vm122_vm9, %v120_v38 }
 0x13e   :  { %134 = dma.vmem_to_hbm [thread:$0]  %s130_s8, 128, %s132_s4, [#allocation3]  }
 0x13f   :  { %179 = dma.done.wait [#allocation3], 128  }
 0x140   :  { %180 = vsyncadd [#allocation3], 4294967168 }
 0x141   :  { %139 = vsyncpa [#allocation3], 1 }

</bundles_post_ra>
